<compile_context>
chip_gen: v7x
topology: tpu7x:2x2x1
jax: 0.10.0
libtpu: 0.0.40
codegen_flags: <defaults>
</compile_context>

<pallas_src>
import functools

import jax
import jax.numpy as jnp
from jax.experimental import pallas as pl
from jax.experimental.pallas import tpu as pltpu


def _dwsep_kernel(xf_ref, wstk_ref, shift_ref, o_ref, xstk_ref, *,
                  kernel_size, Wp, Cp):
    """One batch element: fused depthwise+pointwise conv + BN shift + ReLU.

    xf_ref:   (Cp, L_in)        padded input, spatial flattened onto lanes
    wstk_ref: (Op, K*K*Cp)      folded stacked weights (BN scale folded in)
    shift_ref:(Op, 1)           folded BN shift
    o_ref:    (Op, L_out)       dense (stride-1) output over flattened frame
    xstk_ref: (K*K*Cp, L_out)   im2col-style stacked-window scratch (f32)
    """
    K = kernel_size
    _, L_out = o_ref.shape

    x = xf_ref[...].astype(jnp.float32)                  # (Cp, L_in)

    # Build the stacked window matrix: each tap occupies a sublane-aligned
    # Cp-row block (Cp is a multiple of 8), read at a static lane offset.
    for ki in range(K):
        for kj in range(K):
            t = ki * K + kj
            off = ki * Wp + kj                           # static lane offset
            xstk_ref[t * Cp:(t + 1) * Cp, :] = x[:, off:off + L_out]

    # Single MXU matmul does depthwise + pointwise + BN scale at once.
    y = jnp.dot(wstk_ref[...], xstk_ref[...],
                preferred_element_type=jnp.float32)      # (Op, L_out)
    y = y + shift_ref[...]                               # BN shift
    o_ref[...] = jnp.maximum(y, 0.0).astype(o_ref.dtype)  # ReLU, lane-dense store


def _round_up(v, m):
    return ((v + m - 1) // m) * m


def depthwise_separate_conv_block(x, w_dw, w_pw, bn_gamma, bn_beta,
                                  running_mean=None, running_var=None, *,
                                  kernel_size, stride=1, eps=1e-5):
    """Forward pass of DepthWiseSeparateConvBlock (2d, BN=True, preactivation=False).

    x:     (N, C, H, W) float32, NCHW
    w_dw:  (C, K, K)    depthwise weight (PyTorch (C, 1, K, K) squeezed)
    w_pw:  (O, C)       pointwise weight (PyTorch (O, C, 1, 1) squeezed)
    """
    N, C, H, W = x.shape
    O = w_pw.shape[0]
    K = kernel_size

    # ConstantPadNd semantics from the PyTorch module.
    padding = K - stride
    if padding % 2 != 0:
        lo, hi = padding % 2, padding - padding % 2
    else:
        lo = hi = padding // 2
    xp = jnp.pad(x, ((0, 0), (0, 0), (lo, hi), (lo, hi)))
    Hp, Wp = H + lo + hi, W + lo + hi
    Ho = (Hp - K) // stride + 1
    Wo = (Wp - K) // stride + 1
    # Dense (stride-1) output extent; strided outputs are a decimation of it.
    Hd, Wd = Hp - K + 1, Wp - K + 1

    # Pad channel dims so sublane blocks are tile-aligned.
    Cp = _round_up(C, 8)
    Op = _round_up(O, 8)

    # Lane-dense output slab length (multiple of 128) and padded input length
    # so every shifted-window slice stays in bounds.
    L_out = _round_up(Hd * Wp, 128)
    off_max = (K - 1) * Wp + (K - 1)
    L_in = _round_up(off_max + L_out, 128)

    # Flatten spatial onto the lane axis; zero-pad channels and lanes.
    x_flat = xp.reshape(N, C, Hp * Wp)
    x_flat = jnp.pad(x_flat, ((0, 0), (0, Cp - C), (0, L_in - Hp * Wp)))

    # Fold inference-mode BN (running stats) into scale/shift.
    if running_mean is None:
        running_mean = jnp.zeros((O,), jnp.float32)
    if running_var is None:
        running_var = jnp.ones((O,), jnp.float32)
    bn_scale = (bn_gamma / jnp.sqrt(running_var + eps)).astype(jnp.float32)   # (O,)
    bn_shift = (bn_beta - running_mean * bn_scale).astype(jnp.float32)        # (O,)

    # Channel-padded parameter tensors (padded rows/cols are zero).
    w_pw_p = jnp.zeros((Op, Cp), jnp.float32).at[:O, :C].set(w_pw.astype(jnp.float32))
    w_dw_p = jnp.zeros((Cp, K, K), jnp.float32).at[:C].set(w_dw.astype(jnp.float32))
    scale_p = jnp.zeros((Op,), jnp.float32).at[:O].set(bn_scale)
    shift_p = jnp.zeros((Op, 1), jnp.float32).at[:O, 0].set(bn_shift)

    # Fold depthwise taps, pointwise weight and BN scale into one stacked
    # (Op, K*K*Cp) matrix matching the im2col layout built inside the kernel.
    w_dw_kkc = jnp.transpose(w_dw_p, (1, 2, 0)).reshape(K * K, Cp)            # [t, c]
    w_stack = (scale_p[:, None, None] * w_pw_p[:, None, :]
               * w_dw_kkc[None, :, :]).reshape(Op, K * K * Cp)

    kernel = functools.partial(_dwsep_kernel, kernel_size=K, Wp=Wp, Cp=Cp)
    out_flat = pl.pallas_call(
        kernel,
        out_shape=jax.ShapeDtypeStruct((N, Op, L_out), x.dtype),
        grid_spec=pltpu.PrefetchScalarGridSpec(
            num_scalar_prefetch=0,
            grid=(N,),
            in_specs=[
                pl.BlockSpec((None, Cp, L_in), lambda b: (b, 0, 0)),
                pl.BlockSpec((Op, K * K * Cp), lambda b: (0, 0)),
                pl.BlockSpec((Op, 1), lambda b: (0, 0)),
            ],
            out_specs=pl.BlockSpec((None, Op, L_out), lambda b: (b, 0, 0)),
            scratch_shapes=[pltpu.VMEM((K * K * Cp, L_out), jnp.float32)],
        ),
        compiler_params=pltpu.CompilerParams(
            dimension_semantics=("parallel",)),
    )(x_flat, w_stack, shift_p)

    # Un-flatten the dense frame, drop padded channels, crop the valid window,
    # decimate by stride (pure layout plumbing).
    out = out_flat[:, :O, :Hd * Wp].reshape(N, O, Hd, Wp)
    out = out[:, :, ::stride, 0:Wd:stride]               # (N, O, Ho, Wo)
    assert out.shape == (N, O, Ho, Wo)
    return out


if __name__ == "__main__":
    key = jax.random.PRNGKey(0)
    k1, k2, k3, k4, k5 = jax.random.split(key, 5)

    N, C, H, W = 2, 4, 16, 16     # batch, in_channel, spatial
    O, K, stride = 8, 3, 1        # out_channel, kernel_size, stride

    x = jax.random.normal(k1, (N, C, H, W), jnp.float32)
    w_dw = jax.random.normal(k2, (C, K, K), jnp.float32) * 0.1
    w_pw = jax.random.normal(k3, (O, C), jnp.float32) * 0.1
    bn_gamma = jax.random.uniform(k4, (O,), jnp.float32, minval=0.5, maxval=1.5)
    bn_beta = jax.random.normal(k5, (O,), jnp.float32) * 0.1

    out = depthwise_separate_conv_block(
        x, w_dw, w_pw, bn_gamma, bn_beta, kernel_size=K, stride=stride)
    out = jax.block_until_ready(out)

    # Pure-JAX reference (same padding rule; K - stride is even here).
    pad = (K - stride) // 2
    xp = jnp.pad(x, ((0, 0), (0, 0), (pad, pad), (pad, pad)))
    dw = jax.lax.conv_general_dilated(
        xp, w_dw.reshape(C, 1, K, K), (stride, stride), 'VALID',
        feature_group_count=C, dimension_numbers=('NCHW', 'OIHW', 'NCHW'),
        precision=jax.lax.Precision.HIGHEST)
    pw = jax.lax.conv_general_dilated(
        dw, w_pw.reshape(O, C, 1, 1), (1, 1), 'VALID',
        dimension_numbers=('NCHW', 'OIHW', 'NCHW'),
        precision=jax.lax.Precision.HIGHEST)
    scale = (bn_gamma / jnp.sqrt(1.0 + 1e-5))[None, :, None, None]
    shift = bn_beta[None, :, None, None]
    ref = jnp.maximum(pw * scale + shift, 0.0)

    assert out.shape == ref.shape == (N, O, H, W)
    max_err = float(jnp.max(jnp.abs(out - ref)))
    assert max_err < 1e-3, f"max abs error {max_err}"
    print("KERNEL_OK")
</pallas_src>

<mosaic_0001>
module attributes {stable_mosaic.version = 11 : i64} {
  func.func @_dwsep_kernel(%arg0: i32, %arg1: memref<1x8x512xf32, #tpu.memory_space<vmem>>, %arg2: memref<8x72xf32, #tpu.memory_space<vmem>>, %arg3: memref<8x1xf32, #tpu.memory_space<vmem>>, %arg4: memref<1x8x384xf32, #tpu.memory_space<vmem>>, %arg5: memref<72x384xf32, #tpu.memory_space<vmem>>) attributes {dimension_semantics = [#tpu.dimension_semantics<parallel>], iteration_bounds = array<i64: 2>, scalar_prefetch = 0 : i64, scratch_operands = 1 : i64, tpu.core_type = #tpu.core_type<tc>, window_params = [{transform_indices = @transform_0, window_bounds = array<i64: 1, 8, 512>}, {pipeline_mode = #tpu.pipeline_mode<synchronous>, transform_indices = @transform_1, window_bounds = array<i64: 8, 72>}, {pipeline_mode = #tpu.pipeline_mode<synchronous>, transform_indices = @transform_2, window_bounds = array<i64: 8, 1>}, {transform_indices = @transform_3, window_bounds = array<i64: 1, 8, 384>}]} {
    %c0 = arith.constant 0 : index
    %c0_0 = arith.constant 0 : index
    %c0_1 = arith.constant 0 : index
    %0 = vector.load %arg1[%c0, %c0_0, %c0_1] : memref<1x8x512xf32, #tpu.memory_space<vmem>>, vector<1x8x512xf32>
    %1 = vector.shape_cast %0 : vector<1x8x512xf32> to vector<8x512xf32>
    %2 = vector.extract_strided_slice %1 {offsets = [0, 0], sizes = [8, 384], strides = [1, 1]} : vector<8x512xf32> to vector<8x384xf32>
    %c0_2 = arith.constant 0 : index
    %c0_3 = arith.constant 0 : index
    %3 = vector.load %arg5[%c0_2, %c0_3] : memref<72x384xf32, #tpu.memory_space<vmem>>, vector<8x384xf32>
    tpu.vector_store %arg5[%c0_2, %c0_3], %2 {strides = array<i32>} : memref<72x384xf32, #tpu.memory_space<vmem>>, vector<8x384xf32>,
    %4 = vector.extract_strided_slice %1 {offsets = [0, 1], sizes = [8, 384], strides = [1, 1]} : vector<8x512xf32> to vector<8x384xf32>
    %c8 = arith.constant 8 : index
    %c0_4 = arith.constant 0 : index
    %5 = vector.load %arg5[%c8, %c0_4] : memref<72x384xf32, #tpu.memory_space<vmem>>, vector<8x384xf32>
    tpu.vector_store %arg5[%c8, %c0_4], %4 {strides = array<i32>} : memref<72x384xf32, #tpu.memory_space<vmem>>, vector<8x384xf32>,
    %6 = vector.extract_strided_slice %1 {offsets = [0, 2], sizes = [8, 384], strides = [1, 1]} : vector<8x512xf32> to vector<8x384xf32>
    %c16 = arith.constant 16 : index
    %c0_5 = arith.constant 0 : index
    %7 = vector.load %arg5[%c16, %c0_5] : memref<72x384xf32, #tpu.memory_space<vmem>>, vector<8x384xf32>
    tpu.vector_store %arg5[%c16, %c0_5], %6 {strides = array<i32>} : memref<72x384xf32, #tpu.memory_space<vmem>>, vector<8x384xf32>,
    %8 = vector.extract_strided_slice %1 {offsets = [0, 18], sizes = [8, 384], strides = [1, 1]} : vector<8x512xf32> to vector<8x384xf32>
    %c24 = arith.constant 24 : index
    %c0_6 = arith.constant 0 : index
    %9 = vector.load %arg5[%c24, %c0_6] : memref<72x384xf32, #tpu.memory_space<vmem>>, vector<8x384xf32>
    tpu.vector_store %arg5[%c24, %c0_6], %8 {strides = array<i32>} : memref<72x384xf32, #tpu.memory_space<vmem>>, vector<8x384xf32>,
    %10 = vector.extract_strided_slice %1 {offsets = [0, 19], sizes = [8, 384], strides = [1, 1]} : vector<8x512xf32> to vector<8x384xf32>
    %c32 = arith.constant 32 : index
    %c0_7 = arith.constant 0 : index
    %11 = vector.load %arg5[%c32, %c0_7] : memref<72x384xf32, #tpu.memory_space<vmem>>, vector<8x384xf32>
    tpu.vector_store %arg5[%c32, %c0_7], %10 {strides = array<i32>} : memref<72x384xf32, #tpu.memory_space<vmem>>, vector<8x384xf32>,
    %12 = vector.extract_strided_slice %1 {offsets = [0, 20], sizes = [8, 384], strides = [1, 1]} : vector<8x512xf32> to vector<8x384xf32>
    %c40 = arith.constant 40 : index
    %c0_8 = arith.constant 0 : index
    %13 = vector.load %arg5[%c40, %c0_8] : memref<72x384xf32, #tpu.memory_space<vmem>>, vector<8x384xf32>
    tpu.vector_store %arg5[%c40, %c0_8], %12 {strides = array<i32>} : memref<72x384xf32, #tpu.memory_space<vmem>>, vector<8x384xf32>,
    %14 = vector.extract_strided_slice %1 {offsets = [0, 36], sizes = [8, 384], strides = [1, 1]} : vector<8x512xf32> to vector<8x384xf32>
    %c48 = arith.constant 48 : index
    %c0_9 = arith.constant 0 : index
    %15 = vector.load %arg5[%c48, %c0_9] : memref<72x384xf32, #tpu.memory_space<vmem>>, vector<8x384xf32>
    tpu.vector_store %arg5[%c48, %c0_9], %14 {strides = array<i32>} : memref<72x384xf32, #tpu.memory_space<vmem>>, vector<8x384xf32>,
    %16 = vector.extract_strided_slice %1 {offsets = [0, 37], sizes = [8, 384], strides = [1, 1]} : vector<8x512xf32> to vector<8x384xf32>
    %c56 = arith.constant 56 : index
    %c0_10 = arith.constant 0 : index
    %17 = vector.load %arg5[%c56, %c0_10] : memref<72x384xf32, #tpu.memory_space<vmem>>, vector<8x384xf32>
    tpu.vector_store %arg5[%c56, %c0_10], %16 {strides = array<i32>} : memref<72x384xf32, #tpu.memory_space<vmem>>, vector<8x384xf32>,
    %18 = vector.extract_strided_slice %1 {offsets = [0, 38], sizes = [8, 384], strides = [1, 1]} : vector<8x512xf32> to vector<8x384xf32>
    %c64 = arith.constant 64 : index
    %c0_11 = arith.constant 0 : index
    %19 = vector.load %arg5[%c64, %c0_11] : memref<72x384xf32, #tpu.memory_space<vmem>>, vector<8x384xf32>
    tpu.vector_store %arg5[%c64, %c0_11], %18 {strides = array<i32>} : memref<72x384xf32, #tpu.memory_space<vmem>>, vector<8x384xf32>,
    %c0_12 = arith.constant 0 : index
    %c0_13 = arith.constant 0 : index
    %20 = vector.load %arg2[%c0_12, %c0_13] : memref<8x72xf32, #tpu.memory_space<vmem>>, vector<8x72xf32>
    %c0_14 = arith.constant 0 : index
    %c0_15 = arith.constant 0 : index
    %21 = vector.load %arg5[%c0_14, %c0_15] : memref<72x384xf32, #tpu.memory_space<vmem>>, vector<72x384xf32>
    %cst = arith.constant dense<0.000000e+00> : vector<8x384xf32>
    %22 = tpu.matmul %20, %21, %cst {dimension_numbers = #tpu.dot_dimension_numbers<[1], [0], [0], [1], [0, 0, 1, 1], [], []>} : vector<8x72xf32>, vector<72x384xf32>, vector<8x384xf32> -> vector<8x384xf32>
    %c0_16 = arith.constant 0 : index
    %c0_17 = arith.constant 0 : index
    %23 = vector.load %arg3[%c0_16, %c0_17] : memref<8x1xf32, #tpu.memory_space<vmem>>, vector<8x1xf32>
    %24 = vector.broadcast %23 : vector<8x1xf32> to vector<8x384xf32>
    %25 = arith.addf %22, %24 : vector<8x384xf32>
    %cst_18 = arith.constant 0.000000e+00 : f32
    %26 = vector.broadcast %cst_18 : f32 to vector<8x384xf32>
    %27 = arith.maximumf %25, %26 : vector<8x384xf32>
    %c0_19 = arith.constant 0 : index
    %c0_20 = arith.constant 0 : index
    %c0_21 = arith.constant 0 : index
    %28 = vector.load %arg4[%c0_19, %c0_20, %c0_21] : memref<1x8x384xf32, #tpu.memory_space<vmem>>, vector<1x8x384xf32>
    %29 = vector.shape_cast %28 : vector<1x8x384xf32> to vector<8x384xf32>
    %30 = vector.shape_cast %27 : vector<8x384xf32> to vector<1x8x384xf32>
    tpu.vector_store %arg4[%c0_19, %c0_20, %c0_21], %30 {strides = array<i32>} : memref<1x8x384xf32, #tpu.memory_space<vmem>>, vector<1x8x384xf32>,
    return
  }
  func.func @transform_0(%arg0: i32) -> (i32, i32, i32) {
    %c0_i32 = arith.constant 0 : i32
    %c0_i32_0 = arith.constant 0 : i32
    %c0_i32_1 = arith.constant 0 : i32
    return %arg0, %c0_i32, %c0_i32_0 : i32, i32, i32
  }
  func.func @transform_1(%arg0: i32) -> (i32, i32) {
    %c0_i32 = arith.constant 0 : i32
    %c0_i32_0 = arith.constant 0 : i32
    %c0_i32_1 = arith.constant 0 : i32
    return %c0_i32, %c0_i32_0 : i32, i32
  }
  func.func @transform_2(%arg0: i32) -> (i32, i32) {
    %c0_i32 = arith.constant 0 : i32
    %c0_i32_0 = arith.constant 0 : i32
    %c0_i32_1 = arith.constant 0 : i32
    return %c0_i32, %c0_i32_0 : i32, i32
  }
  func.func @transform_3(%arg0: i32) -> (i32, i32, i32) {
    %c0_i32 = arith.constant 0 : i32
    %c0_i32_0 = arith.constant 0 : i32
    %c0_i32_1 = arith.constant 0 : i32
    return %arg0, %c0_i32, %c0_i32_0 : i32, i32, i32
  }
}

</mosaic_0001>

<bundles_post_ra>
// kernel: tpu_custom_call.1
= control target key start
LH: loop header
LB: loop body
LE: loop exit
PB: predicated region body
PF: predicated region fallthrough
CT: control target
= control target key end

     0   :  { %8 = vsyncpa [#allocation4], 0  ;;  %s1157_s0 = inlined_call_operand.hbm [shape: f32[2,8,512], index: 0, kind: input, shape index: {}]   ;;  %s1158_s1 = inlined_call_operand.vmem [shape: f32[8,72], index: 1, kind: input, shape index: {}]   ;;  %s1159_s2 = inlined_call_operand.vmem [shape: f32[8,1], index: 2, kind: input, shape index: {}]   ;;  %s1160_s3 = inlined_call_operand.hbm [shape: f32[2,8,384], index: 3, kind: output, shape index: {}]  }
   0x1   :  { %10 = vsyncpa [#allocation4 + $0x1], 0 }
   0x2   :  { %11 = vsyncpa [#allocation5], 0 }
   0x3   :  { %13 = vsyncpa [#allocation5 + $0x1], 0  ;;  %s948_s12 = smov 0   ;;  %s950_s13 = smov 0  }
   0x4   :  { %s952_s14 = smov 0   ;;  %s954_s15 = smov 0  }
   0x5 LB: > { %s969_s16 = sadd.s32 4294967295, %s912_s15   ;;  %s612_s17 = sadd.s32 4294967294, %s912_s15   ;;  %s912_s15 = sphi %s954_s15, %s1175_s15   ;;  %s908_s14 = sphi %s952_s14, %s1174_s14   ;;  %s904_s13 = sphi %s950_s13, %s1173_s13   ;;  %s900_s12 = sphi %s948_s12, %s1172_s12  }
   0x6   : > { %s973_s18 = sadd.s32 1, %s912_s15   ;;  %s26_s19 = sadd.s32 1, %s908_s14 }
   0x7   : > { %s23_s20 = ssub.s32 %s912_s15, %s973_s18  ;;  %p33_p0 = scmp.ne.s32.totalorder %s908_s14, %s904_s13 }
   0x8   : > { %p24_p1 = scmp.eq.s32.totalorder %s23_s20, 0  ;;  %p34_p2 = scmp.eq.s32.totalorder %s912_s15, 0 }
   0x9   : > { %p39_p3 = scmp.ne.s32.totalorder %s904_s13, %s900_s12  ;;  %p40_p4 = scmp.eq.s32.totalorder %s969_s16, 0 }
   0xa   : > { %s985_s21 = scalar_select %p24_p1, %s908_s14, %s26_s19  }
   0xb   : > { %p987_p5 = por %p34_p2, %p33_p0  ;;  %p991_p6 = por %p40_p4, %p39_p3 }
   0xc   : > { %p105_p7 = scmp.eq.s32.totalorder %s969_s16, 1  ;;  %p111_p8 = scmp.eq.s32.totalorder %s612_s17, 1 }
   0xd   : > { %p699_p10 = scmp.lt.s32.totalorder %s912_s15, 2  ;;  %s137_s26 = sand.u32 1, %s908_s14  }
   0xe   : > { %p998_p11 = por %p105_p7, %p33_p0  ;;  %p1002_p12 = por %p111_p8, %p39_p3 }
   0xf   : > { %s625_s27 = sshll.u32 %s912_s15, 9  ;;  %s615_s28 = sshll.u32 %s137_s26, 5 }
  0x10   : > { %s1164_s24 = scalar_select %p998_p11, 1, 0 }
  0x11   : > { %s1165_s25 = scalar_select %p1002_p12, 1, 0 }
  0x12   : > { %s1011_s4 = scalar_lea.hbm %s1157_s0, %s625_s27  ;;  %s141_s5 = scalar_lea.vmem [#allocation3], %s615_s28 }
  0x13   : > { %s149_s6 = sshll.u32 %s141_s5, 4  ;;  %p1015_p13 = pnand %p699_p10, %p987_p5  ;;  %s1019_s6 = int_to_ptr.vmem [resolvable:$true] %s149_s6 }
  0x14   : > { %s138_s8 = scalar_lea.sflag [#allocation4], %s137_s26  ;;  %s816_s9 = scalar_lea.hbm %s1011_s4, 512 }
  0x15   : > { %p817_p2 = scmp.ne.s32.totalorder %s1011_s4, %s816_s9  ;;  %p818_p3 = pneg %p1015_p13 }
  0x16   : > { %s821_s17 = scalar_lea.hbm %s1157_s0, 1024  ;;  %p822_p5 = scmp.lt.u32.totalorder %s1011_s4, %s1157_s0 }
  0x17   : > { %p819_p4 = pnand %p818_p3, %p817_p2  ;;  %p823_p8 = scmp.lt.u32.totalorder %s821_s17, %s816_s9 }
  0x18   : > { %p825_p9 = scmp.lt.u32.totalorder %s816_s9, %s1011_s4 }
  0x19   : > { %p820_p7 = pneg %p819_p4  ;;  %p824_p10 = por %p823_p8, %p822_p5 }
  0x1b   : > { %p826_p0 = por %p825_p9, %p824_p10 }
  0x1d   : > { %p827_p1 = pnand %p826_p0, %p820_p7 }
  0x1f   : > { %830 = shalt.err (!%p827_p1)
}
  0x20   : > { %s831_s22 = scalar_lea.vmem %s1019_s6, 512  ;;  %s914_s26 = smov [#allocation3]  }
  0x21   : > { %p832_p2 = scmp.ne.s32.totalorder %s1019_s6, %s831_s22  ;;  %s836_s27 = sshll.u32 %s914_s26, 4  ;;  %s837_s27 = int_to_ptr.vmem [resolvable:$false] %s836_s27 }
  0x22   : > { %s838_s28 = scalar_lea.vmem %s837_s27, 1024  ;;  %p839_p11 = scmp.lt.s32.totalorder %s1019_s6, %s837_s27 }
  0x23   : > { %p834_p4 = pnand %p832_p2, %p818_p3  ;;  %p840_p5 = scmp.lt.s32.totalorder %s838_s28, %s831_s22 }
  0x25   : > { %p835_p12 = pneg %p834_p4  ;;  %p841_p8 = por %p840_p5, %p839_p11 }
  0x27   : > { %p842_p9 = pnand %p841_p8, %p835_p12 }
  0x29   : > { %845 = shalt.err (!%p842_p9)
}
  0x2a   : > { %694 = dma.hbm_to_vmem [thread:$0]  (!%p1015_p13), %s1011_s4, 512, %s1019_s6, %s138_s8  }
  0x2b   : > { %p1167_p0 = scmp.lt.s32.totalorder %s912_s15, 3  ;;  %p1168_p1 = scmp.ge.s32.totalorder %s912_s15, 1 }
  0x2d   : > { %p155_p3 = pnand %p1168_p1, %p1167_p0 }
  0x2e   : > { %s1053_s29 = sand.u32 (!%p155_p3), 1, %s904_s13  }
  0x2f   : > { %158 = sbr.rel (%p155_p3) target bundleno = 438 (0x1b6), region = 32  ;;  %s619_s30 = sshll.u32 (!%p155_p3), %s1053_s29, 5 }
  0x30   : > { %s161_s5 = scalar_lea.sflag (!%p155_p3), [#allocation4], %s1053_s29  ;;  %s164_s9 = scalar_lea.vmem (!%p155_p3), [#allocation3], %s619_s30 }
  0x36   : > { %891 = dma.done.wait (%p991_p6), %s161_s5, 512  }
  0x37   : > { %893 = vsyncadd (%p991_p6), %s161_s5, 4294966784  ;;  %v915_v0 = vmov 0.0|0.0   ;;  %v188_v1 = vld [vmem:[%s164_s9 + $0x8] sm:$0xff]  ;;  %v1062_v2 = vld [vmem:[%s164_s9 + $0x10] sm:$0xff]  ;;  %s916_s4 = smov 126   ;;  %s917_s6 = smov 127  }
  0x38   : > { %673 = vmatprep.subr.bf16.mxu1 %v915_v0  ;;  %v1064_v3 = vld [vmem:[%s164_s9] sm:$0xff]  ;;  %v755_v4 = vpack.i.bf16 %v1062_v2, %v188_v1  ;;  %v190_v5 = vld [vmem:[%s164_s9 + $0x18] sm:$0xff]  ;;  %s918_s7 = smov 110   ;;  %s919_s23 = smov 108   ;;  %v921_v7 = vmov 0.0   ;;  %vm924_vm0 = vmmov 0  }
  0x39   : > { %v750_v6 = vpack.i.bf16 %v190_v5, %v1064_v3  ;;  %s920_s8 = smov 109   ;;  %444 = vmatprep.mubr.f32.mxu0 %v921_v7  ;;  %s922_s10 = smov 91   ;;  %654 = vmatprep.mubr.msk.f32.mxu1 %vm924_vm0, %v921_v7  ;;  %v925_v8 = vmov 0   ;;  %v370_v9 = vld [vmem:[%s1159_s2] sm:$0xff]  ;;  %vm206_vm1 = vcmask 1039360   ;;  %vm224_vm2 = vcmask 1031168  }
  0x3a   : > { %756 = vrot.lane.b32.xlu1 %v755_v4, %s916_s4  ;;  %746 = vrot.lane.b32.xlu0 %v755_v4, %s917_s6  ;;  %s923_s11 = smov 92   ;;  %s926_s17 = smov 90   ;;  %vm242_vm3 = vcmask 900096   ;;  %vm260_vm4 = vcmask 891904   ;;  %vm278_vm5 = vcmask 883712   ;;  %vm296_vm6 = vcmask 752640  }
  0x3b   : > { %815 = vset.pattern.permute.xlu0 %v925_v8  ;;  %vm314_vm7 = vcmask 744448   ;;  %vm332_vm8 = vcmask 736256   ;;  %vm376_vm9 = vcmask 588800   ;;  %s685_s27 = smul.u32 24, %s1053_s29  ;;  %p1169_p11 = scmp.ne.s32.totalorder %s1164_s24, 0 }
  0x3c   : > { %s686_s28 = smul.u32 384, %s969_s16  ;;  %s528_s16 = scalar_lea.sflag [#allocation5], %s1053_s29 }
  0x3d   : > { %s186_s30 = scalar_lea.vmem [#allocation6], %s685_s27 }
  0x3e   : > { %761 = vrot.lane.b32.xlu1 %v755_v4, %s918_s7  ;;  %751 = vrot.lane.b32.xlu0 %v750_v6, %s917_s6  ;;  %s542_s5 = sshll.u32 %s186_s30, 4  ;;  %s1113_s6 = scalar_lea.hbm %s1160_s3, %s686_s28  ;;  %s1115_s5 = int_to_ptr.vmem [resolvable:$true] %s542_s5 }
  0x42   : > { %771 = vrot.lane.b32.xlu1 %v750_v6, %s918_s7  ;;  %766 = vrot.lane.b32.xlu0 %v750_v6, %s916_s4  ;;  %s846_s7 = scalar_lea.vmem %s1115_s5, 384 }
  0x43   : > { %p847_p6 = scmp.ne.s32.totalorder %s1115_s5, %s846_s7 }
  0x45   : > { %p848_p12 = pnand %p847_p6, %p1169_p11 }
  0x46   : > { %781 = vrot.lane.b32.xlu1 %v755_v4, %s919_s23  ;;  %776 = vrot.lane.b32.xlu0 %v755_v4, %s920_s8 }
  0x47   : > { %p849_p13 = pneg %p848_p12 }
  0x4a   : > { %791 = vrot.lane.b32.xlu1 %v750_v6, %s919_s23  ;;  %786 = vrot.lane.b32.xlu0 %v750_v6, %s920_s8  ;;  %s927_s23 = smov [#allocation6]  }
  0x4b   : > { %s850_s8 = sshll.u32 %s927_s23, 4  ;;  %s851_s8 = int_to_ptr.vmem [resolvable:$false] %s850_s8 }
  0x4c   : > { %p853_p7 = scmp.lt.s32.totalorder %s1115_s5, %s851_s8 }
  0x4e   : > { %801 = vrot.lane.b32.xlu1 %v755_v4, %s922_s10  ;;  %796 = vrot.lane.b32.xlu0 %v755_v4, %s923_s11 }
  0x52   : > { %811 = vrot.lane.b32.xlu1 %v750_v6, %s922_s10  ;;  %806 = vrot.lane.b32.xlu0 %v750_v6, %s923_s11  ;;  %s852_s10 = scalar_lea.vmem %s851_s8, 768 }
  0x53   : > { %p854_p10 = scmp.lt.s32.totalorder %s852_s10, %s846_s7 }
  0x55   : > { %p855_p2 = por %p854_p10, %p853_p7 }
  0x56   : > { %328 = vrot.lane.b32.xlu1 %v1062_v2, %s926_s17  ;;  %326 = vrot.lane.b32.xlu0 %v188_v1, %s926_s17 }
  0x57   : > { %p856_p4 = pnand %p855_p2, %p849_p13 }
  0x5a   : > { %330 = vrot.lane.b32.xlu1 %v190_v5, %s926_s17  ;;  %324 = vrot.lane.b32.xlu0 %v1064_v3, %s926_s17 }
  0x5e   : > { %373 = vperm.xlu0 %815, %v370_v9  }
  0xac   : > { %v757_v10 = vpop.permute.xlu1 %756  ;;  %v747_v11 = vpop.permute.xlu0 %746 }
  0xad   : > { %v749_v12 = vunpack.i.h.bf16 %v747_v11  ;;  %v748_v13 = vunpack.i.l.bf16 %v747_v11  ;;  %v759_v14 = vunpack.i.h.bf16 %v757_v10  ;;  %v758_v15 = vunpack.i.l.bf16 %v757_v10 }
  0xaf   : > { %v208_v16 = vsel %vm206_vm1, %v748_v13, %v749_v12  ;;  %v226_v26 = vsel %vm224_vm2, %v758_v15, %v759_v14 }
  0xb0   : > { %v762_v17 = vpop.permute.xlu1 %761  ;;  %v752_v18 = vpop.permute.xlu0 %751  ;;  %v657_v19 = vpack.c.bf16 %v208_v16, %v188_v1 }
  0xb1   : > { %v764_v20 = vunpack.i.h.bf16 %v762_v17  ;;  %v763_v21 = vunpack.i.l.bf16 %v762_v17  ;;  %v754_v22 = vunpack.i.h.bf16 %v752_v18  ;;  %v753_v23 = vunpack.i.l.bf16 %v752_v18 }
  0xb2   : > { %658 = vmatprep.subr.bf16.mxu0 %v657_v19 }
  0xb3   : > { %v207_v24 = vsel %vm206_vm1, %v753_v23, %v748_v13  ;;  %v209_v25 = vsel %vm206_vm1, %v749_v12, %v754_v22  ;;  %v244_v27 = vsel %vm242_vm3, %v763_v21, %v764_v20 }
  0xb4   : > { %v772_v28 = vpop.permute.xlu1 %771  ;;  %v767_v29 = vpop.permute.xlu0 %766  ;;  %v659_v30 = vpack.c.bf16 %v207_v24, %v1064_v3  ;;  %v674_v31 = vpack.c.bf16 %v209_v25, %v1062_v2  ;;  %v661_v32 = vpack.c.bf16 %v244_v27, %v226_v26  ;;  %v342_v27 = vld [vmem:[%s1158_s1] sm:$0xff] }
  0xb5   : > { %v774_v33 = vunpack.i.h.bf16 %v772_v28  ;;  %v773_v34 = vunpack.i.l.bf16 %v772_v28  ;;  %v769_v35 = vunpack.i.h.bf16 %v767_v29  ;;  %v768_v36 = vunpack.i.l.bf16 %v767_v29 }
  0xb6   : > { %660 = vmatpush1.bf16.msra.mxu0 %v659_v30  ;;  %675 = vmatpush3.bf16.msra.mxu1 %v674_v31 }
  0xb7   : > { %662 = vmatprep.subr.bf16.mxu0 %v661_v32  ;;  %676 = vmatprep.subr.bf16.mxu1 %v915_v0  ;;  %v225_v37 = vsel %vm224_vm2, %v768_v36, %v758_v15  ;;  %v243_v38 = vsel %vm242_vm3, %v773_v34, %v763_v21  ;;  %v227_v39 = vsel %vm224_vm2, %v759_v14, %v769_v35 }
  0xb8   : > { %v782_v40 = vpop.permute.xlu1 %781  ;;  %v777_v41 = vpop.permute.xlu0 %776  ;;  %v663_v42 = vpack.c.bf16 %v243_v38, %v225_v37  ;;  %v245_v43 = vsel %vm242_vm3, %v764_v20, %v774_v33 }
  0xb9   : > { %v784_v44 = vunpack.i.h.bf16 %v782_v40  ;;  %v783_v45 = vunpack.i.l.bf16 %v782_v40  ;;  %v779_v46 = vunpack.i.h.bf16 %v777_v41  ;;  %v778_v47 = vunpack.i.l.bf16 %v777_v41 }
  0xba   : > { %664 = vmatpush1.bf16.msra.mxu0 %v663_v42  ;;  %v677_v48 = vpack.c.bf16 %v245_v43, %v227_v39 }
  0xbb   : > { %v262_v49 = vsel %vm260_vm4, %v778_v47, %v779_v46  ;;  %v280_v50 = vsel %vm278_vm5, %v783_v45, %v784_v44 }
  0xbc   : > { %678 = vmatpush3.bf16.msra.mxu1 %v677_v48  ;;  %v792_v51 = vpop.permute.xlu1 %791  ;;  %v787_v52 = vpop.permute.xlu0 %786  ;;  %v665_v53 = vpack.c.bf16 %v280_v50, %v262_v49 }
  0xbd   : > { %v794_v54 = vunpack.i.h.bf16 %v792_v51  ;;  %v793_v55 = vunpack.i.l.bf16 %v792_v51  ;;  %v789_v56 = vunpack.i.h.bf16 %v787_v52  ;;  %v788_v57 = vunpack.i.l.bf16 %v787_v52  ;;  %679 = vmatprep.subr.bf16.mxu1 %v915_v0 }
  0xbe   : > { %666 = vmatprep.subr.bf16.mxu0 %v665_v53 }
  0xbf   : > { %v261_v58 = vsel %vm260_vm4, %v788_v57, %v778_v47  ;;  %v279_v59 = vsel %vm278_vm5, %v793_v55, %v783_v45  ;;  %v263_v60 = vsel %vm260_vm4, %v779_v46, %v789_v56  ;;  %v281_v61 = vsel %vm278_vm5, %v784_v44, %v794_v54 }
  0xc0   : > { %v802_v62 = vpop.permute.xlu1 %801  ;;  %v797_v63 = vpop.permute.xlu0 %796  ;;  %v667_v1 = vpack.c.bf16 %v279_v59, %v261_v58  ;;  %v680_v2 = vpack.c.bf16 %v281_v61, %v263_v60 }
  0xc1   : > { %v804_v3 = vunpack.i.h.bf16 %v802_v62  ;;  %v803_v4 = vunpack.i.l.bf16 %v802_v62  ;;  %v799_v5 = vunpack.i.h.bf16 %v797_v63  ;;  %v798_v6 = vunpack.i.l.bf16 %v797_v63 }
  0xc2   : > { %668 = vmatpush1.bf16.msra.mxu0 %v667_v1  ;;  %681 = vmatpush3.bf16.msra.mxu1 %v680_v2 }
  0xc3   : > { %v298_v8 = vsel %vm296_vm6, %v798_v6, %v799_v5  ;;  %v316_v9 = vsel %vm314_vm7, %v803_v4, %v804_v3  ;;  %682 = vmatprep.subr.bf16.mxu1 %v915_v0 }
  0xc4   : > { %v812_v10 = vpop.permute.xlu1 %811  ;;  %v807_v11 = vpop.permute.xlu0 %806  ;;  %v669_v12 = vpack.c.bf16 %v316_v9, %v298_v8 }
  0xc5   : > { %v814_v13 = vunpack.i.h.bf16 %v812_v10  ;;  %v813_v14 = vunpack.i.l.bf16 %v812_v10  ;;  %v809_v15 = vunpack.i.h.bf16 %v807_v11  ;;  %v808_v16 = vunpack.i.l.bf16 %v807_v11 }
  0xc6   : > { %670 = vmatprep.subr.bf16.mxu0 %v669_v12 }
  0xc7   : > { %v297_v17 = vsel %vm296_vm6, %v808_v16, %v798_v6  ;;  %v315_v18 = vsel %vm314_vm7, %v813_v14, %v803_v4  ;;  %v299_v19 = vsel %vm296_vm6, %v799_v5, %v809_v15  ;;  %v317_v20 = vsel %vm314_vm7, %v804_v3, %v814_v13 }
  0xc8   : > { %v329_v21 = vpop.permute.xlu1 %328  ;;  %v327_v22 = vpop.permute.xlu0 %326  ;;  %v671_v0 = vpack.c.bf16 %v315_v18, %v297_v17  ;;  %v683_v23 = vpack.c.bf16 %v317_v20, %v299_v19 }
  0xc9   : > { %v334_v24 = vsel %vm332_vm8, %v327_v22, %v329_v21 }
  0xca   : > { %672 = vmatpush1.bf16.msra.mxu0 %v671_v0  ;;  %684 = vmatpush3.bf16.msra.mxu1 %v683_v23 }
  0xcb   : > { %396 = vmatprep.subr.mxu0 %v334_v24  ;;  %652 = vmatprep.subr.mxu1 %v921_v7 }
  0xcc   : > { %v331_v25 = vpop.permute.xlu1 %330  ;;  %v325_v26 = vpop.permute.xlu0 %324 }
  0xcd   : > { %v333_v28 = vsel %vm332_vm8, %v325_v26, %v327_v22  ;;  %v335_v29 = vsel %vm332_vm8, %v329_v21, %v331_v25 }
  0xce   : > { %397 = vmatpush1.msra.mxu0 %v333_v28  ;;  %653 = vmatpush3.msra.mxu1 %v335_v29 }
  0xcf   : > { %620 = vmatmul.mubr.msk.f32.vlgmr.msra.gmra.mrb[0].mxu0 %vm376_vm9, %v342_v27  ;;  %655 = vmatmul.mubr.msk.f32.vlgmr.msra.gmra.mrb[0].mxu1 %vm376_vm9, %v342_v27 }
  0xdd   : > { %v374_v30 = vpop.permute.xlu0 %373 }
 0x1a2   : > { %v446_v31 = vpop.f32.mrb[0].mxu0  ;;  %v517_v32 = vpop.f32.mrb[0].mxu1 }
 0x1a3   : > { %v447_v7 = vadd.f32 %v446_v31, %v374_v30  ;;  %v518_v33 = vadd.f32 %v517_v32, %v374_v30  ;;  %v448_v34 = vpop.f32.mrb[1].mxu0  ;;  %v656_v35 = vpop.f32.mrb[1].mxu1 }
 0x1a4   : > { %v449_v36 = vadd.f32 %v448_v34, %v374_v30 }
 0x1a5   : > { %v521_v37 = vmax.f32 %v447_v7, 0.0  ;;  %v523_v38 = vmax.f32 %v518_v33, 0.0 }
 0x1a6   : > { %v522_v39 = vmax.f32 %v449_v36, 0.0 }
 0x1a7   : > { %524 = vst [vmem:[%s186_s30] sm:$0xff] %v521_v37  ;;  %526 = vst [vmem:[%s186_s30 + $0x10] sm:$0xff] %v523_v38 }
 0x1a8   : > { %525 = vst [vmem:[%s186_s30 + $0x8] sm:$0xff] %v522_v39 }
 0x1a9   : > { %859 = shalt.err (!%p856_p4)
}
 0x1aa   : > { %s860_s29 = scalar_lea.hbm %s1113_s6, 384  ;;  %s864_s19 = scalar_lea.hbm %s1160_s3, 768 }
 0x1ab   : > { %p861_p5 = scmp.ne.s32.totalorder %s1113_s6, %s860_s29  ;;  %p865_p0 = scmp.lt.u32.totalorder %s1113_s6, %s1160_s3 }
 0x1ac   : > { %p866_p1 = scmp.lt.u32.totalorder %s864_s19, %s860_s29  ;;  %p868_p6 = scmp.lt.u32.totalorder %s860_s29, %s1113_s6 }
 0x1ad   : > { %p862_p8 = pnand %p861_p5, %p1169_p11 }
 0x1ae   : > { %p867_p3 = por %p866_p1, %p865_p0 }
 0x1af   : > { %p863_p9 = pneg %p862_p8 }
 0x1b0   : > { %p869_p12 = por %p868_p6, %p867_p3 }
 0x1b2   : > { %p870_p13 = pnand %p869_p12, %p863_p9 }
 0x1b4   : > { %873 = shalt.err (!%p870_p13)
}
 0x1b5   : > { %689 = dma.vmem_to_hbm [thread:$0]  (%p1169_p11), %s1115_s5, 384, %s1113_s6, %s528_s16  }
 0x1b6 PF: > { %s554_s26 = sand.u32 1, %s900_s12   ;;  %p1170_p7 = scmp.ne.s32.totalorder %s1165_s25, 0 }
 0x1b7   : > { %p1171_p10 = scmp.ge.s32.totalorder %s912_s15, 2  ;;  %s555_s27 = scalar_lea.sflag [#allocation5], %s554_s26 }
 0x1b9   : > { %p696_p2 = pnand %p1171_p10, %p1170_p7 }
 0x1bb   : > { %895 = dma.done.wait (!%p696_p2), %s555_s27, 384  }
 0x1bc   : > { %897 = vsyncadd (!%p696_p2), %s555_s27, 4294966912  ;;  %p16_p4 = scmp.ge.s32.totalorder %s973_s18, 4   ;;  %s1172_s12 = smov %s904_s13 }
 0x1bd   : > { %s1173_s13 = smov %s908_s14  ;;  %s1174_s14 = smov %s985_s21 }
 0x1be   : > { %s1175_s15 = smov %s973_s18  ;;  %18 = sbr.rel (!%p16_p4) target bundleno = 5 (0x5), region = 77 }
 0x1c5   :  { %560 = vsyncpa [#allocation4], 1 }
 0x1c6   :  { %562 = vsyncpa [#allocation4 + $0x1], 1 }
 0x1c7   :  { %563 = vsyncpa [#allocation5], 1 }
 0x1c8   :  { %565 = vsyncpa [#allocation5 + $0x1], 1 }

</bundles_post_ra>
